<compile_context>
chip_gen: v6e
topology: v6e:2x2x1
jax: 0.10.0
libtpu: 0.0.40
codegen_flags: <defaults>
</compile_context>

<pallas_src>
import functools
import math

import numpy as np

import jax
import jax.numpy as jnp
from jax.experimental import pallas as pl
from jax.experimental.pallas import tpu as pltpu

# ----------------------- synthetic module configuration -----------------------
HEADS = {"hm": 3, "reg": 2, "wh": 2}          # head -> num output classes
HEAD_CONVS = {"hm": [32], "reg": [32], "wh": [32]}
NUM_STACKS = 1
LAST_CHANNEL = 8
HEAD_KERNEL = 3                                # opt['head_kernel'] default
PRIOR_BIAS = -4.6                              # opt['prior_bias'] for 'hm' heads


# --------------------------------- kernel -------------------------------------
def _fused_heads_kernel(x_ref, mask_ref, w1_ref, b1_ref, w2_ref, b2_ref,
                        out_ref, pat_ref, hid_ref, *, K, W):
    """Fused KxK conv + bias -> ReLU -> block-diagonal 1x1 conv + bias.

      x_ref   : (Cin, NHW)            input, channels on sublanes, lane-dense
      mask_ref: (K*K, NHW)            per-tap border validity mask (1./0.)
      w1_ref  : (sum_Cmid, K*K*Cin)   all heads' KxK weights, tap-major cols
      b1_ref  : (sum_Cmid, 1)
      w2_ref  : (sum_classes, sum_Cmid)  block-diagonal fused 1x1 weights
      b2_ref  : (sum_classes, 1)
      out_ref : (sum_classes, NHW)    single lane-dense output
      pat_ref : (K*K*Cin, NHW)        VMEM scratch: im2col matrix
      hid_ref : (sum_Cmid, NHW)       VMEM scratch: post-ReLU hidden
    """
    Cin, NHW = x_ref.shape
    pad = K // 2
    x = x_ref[...]

    # ---- im2col via lane rotations + border mask ----
    # pat[t*Cin + c, p] = x[c, p + d] * valid(t, p),  d = (ky-pad)*W + (kx-pad)
    # The roll wraps across image/batch boundaries only where the mask is 0.
    for ky in range(K):
        for kx in range(K):
            t = ky * K + kx
            d = (ky - pad) * W + (kx - pad)
            shift = (-d) % NHW
            rolled = pltpu.roll(x, shift=shift, axis=1) if shift else x
            pat_ref[t * Cin:(t + 1) * Cin, :] = rolled * mask_ref[t:t + 1, :]

    # ---- fused KxK conv for ALL heads: one (96,72)@(72,NHW) matmul ----
    hid_ref[...] = jnp.maximum(
        jnp.dot(w1_ref[...], pat_ref[...],
                preferred_element_type=jnp.float32) + b1_ref[...],
        0.0)

    # ---- fused per-head 1x1 convs: one block-diagonal (7,96)@(96,NHW) ----
    out = jnp.dot(w2_ref[...], hid_ref[...],
                  preferred_element_type=jnp.float32) + b2_ref[...]
    out_ref[...] = out.astype(out_ref.dtype)


def _make_tap_mask(N, H, W, K, dtype):
    """(K*K, N*H*W) validity mask for SAME padding, tiled over the batch."""
    pad = K // 2
    yy = np.arange(H).reshape(H, 1)
    xx = np.arange(W).reshape(1, W)
    rows = []
    for ky in range(K):
        for kx in range(K):
            dy, dx = ky - pad, kx - pad
            valid = ((yy + dy >= 0) & (yy + dy < H) &
                     (xx + dx >= 0) & (xx + dx < W))
            rows.append(valid.reshape(-1))
    mask = np.stack(rows, 0).astype(np.float32)     # (K*K, H*W)
    mask = np.tile(mask, (1, N))                    # (K*K, N*H*W)
    return jnp.asarray(mask, dtype=dtype)


def run_fused_heads(x_nchw, fused):
    """All heads (KxK conv -> ReLU -> 1x1 conv) in ONE Pallas kernel call."""
    N, Cin, H, W = x_nchw.shape
    K = HEAD_KERNEL
    NHW = N * H * W
    KKC = K * K * Cin
    cmid_total = sum(fused["head_cmids"])
    cls_total = sum(fused["head_classes"])

    # (N, Cin, H, W) -> (Cin, N*H*W): channels on sublanes, flattened
    # batch*spatial on lanes (lane-dense everywhere inside the kernel).
    x_c = jnp.transpose(x_nchw, (1, 0, 2, 3)).reshape(Cin, NHW)
    mask = _make_tap_mask(N, H, W, K, x_nchw.dtype)

    kern = functools.partial(_fused_heads_kernel, K=K, W=W)

    out = pl.pallas_call(
        kern,
        out_shape=jax.ShapeDtypeStruct((cls_total, NHW), x_nchw.dtype),
        grid=(1,),
        in_specs=[
            pl.BlockSpec((Cin, NHW), lambda i: (0, 0)),
            pl.BlockSpec((K * K, NHW), lambda i: (0, 0)),
            pl.BlockSpec((cmid_total, KKC), lambda i: (0, 0)),
            pl.BlockSpec((cmid_total, 1), lambda i: (0, 0)),
            pl.BlockSpec((cls_total, cmid_total), lambda i: (0, 0)),
            pl.BlockSpec((cls_total, 1), lambda i: (0, 0)),
        ],
        out_specs=pl.BlockSpec((cls_total, NHW), lambda i: (0, 0)),
        scratch_shapes=[
            pltpu.VMEM((KKC, NHW), jnp.float32),          # im2col matrix
            pltpu.VMEM((cmid_total, NHW), jnp.float32),   # hidden activations
        ],
        compiler_params=pltpu.CompilerParams(
            dimension_semantics=("arbitrary",)),
    )(x_c, mask, fused["w1"], fused["b1"], fused["w2bd"], fused["b2"])
    return out                                    # (sum_classes, N*H*W)


# ----------------------------- parameter setup ---------------------------------
def init_params(key):
    """Deterministic synthetic init matching the torch module's shapes/rules."""
    per_head = {}
    head_names = list(HEADS)                       # torch iterates self.heads
    head_classes = [HEADS[h] for h in head_names]
    head_cmids = [HEAD_CONVS[h][0] for h in head_names]
    cmid_total = sum(head_cmids)
    cls_total = sum(head_classes)
    K = HEAD_KERNEL
    KKC = K * K * LAST_CHANNEL

    w1_rows, b1_parts, b2_parts = [], [], []
    w2bd = np.zeros((cls_total, cmid_total), np.float32)
    class_offs = []
    coff = moff = 0
    for head, classes, cmid in zip(head_names, head_classes, head_cmids):
        key, k1, k2, k3 = jax.random.split(key, 4)
        fan1 = LAST_CHANNEL * K * K
        # torch weight layout is (Cout, Cin, kH, kW).
        w1_oihw = jax.random.normal(
            k1, (cmid, LAST_CHANNEL, K, K), jnp.float32) * (1.0 / math.sqrt(fan1))
        b1 = jax.random.uniform(
            k2, (cmid,), jnp.float32,
            -1.0 / math.sqrt(fan1), 1.0 / math.sqrt(fan1))
        w2 = jax.random.normal(
            k3, (classes, cmid), jnp.float32) * (1.0 / math.sqrt(cmid))
        if "hm" in head:
            b2 = jnp.full((classes,), PRIOR_BIAS, jnp.float32)   # prior_bias fill
        else:
            b2 = jnp.zeros((classes,), jnp.float32)              # fill_fc_weights
        per_head[head] = dict(w1_oihw=w1_oihw, b1=b1, w2=w2, b2=b2)

        # Kernel layout: w1 rows = out channel, cols = (ky*K + kx)*Cin + c.
        w1_rows.append(jnp.transpose(w1_oihw, (0, 2, 3, 1)).reshape(cmid, KKC))
        b1_parts.append(b1)
        # Block-diagonal fused 1x1 weights.
        w2bd[coff:coff + classes, moff:moff + cmid] = np.asarray(w2)
        b2_parts.append(b2)
        class_offs.append(coff)
        coff += classes
        moff += cmid

    fused = dict(
        head_names=head_names,
        head_classes=head_classes,
        head_cmids=head_cmids,
        class_offs=class_offs,
        w1=jnp.concatenate(w1_rows, axis=0),           # (sum_Cmid, K*K*Cin)
        b1=jnp.concatenate(b1_parts).reshape(-1, 1),   # (sum_Cmid, 1)
        w2bd=jnp.asarray(w2bd),                        # (sum_cls, sum_Cmid) block-diag
        b2=jnp.concatenate(b2_parts).reshape(-1, 1),   # (sum_cls, 1)
    )
    return dict(per_head=per_head, fused=fused)


# -------------------------------- forward --------------------------------------
def base_model_forward(params, x_nchw):
    """BaseModel.forward with pre_img=pre_hm=None and model_output_list=False."""
    # TODO(synk): img2feats/imgpre2feats are abstract (NotImplementedError) in
    # BaseModel; the synthetic backbone here is identity: feats[s] = x.
    N, _, H, W = x_nchw.shape
    fused = params["fused"]
    out = []
    for _ in range(NUM_STACKS):
        flat = run_fused_heads(x_nchw, fused)          # (sum_classes, N*H*W)
        z = {}
        for head, coff, classes in zip(fused["head_names"],
                                       fused["class_offs"],
                                       fused["head_classes"]):
            o = flat[coff:coff + classes, :].reshape(classes, N, H, W)
            z[head] = jnp.transpose(o, (1, 0, 2, 3))   # tiny -> NCHW
        out.append(z)
    return out


def _reference_head(x_nchw, p):
    """Pure-JAX reference (lax conv, NCHW) for correctness checking."""
    h = jax.lax.conv_general_dilated(
        x_nchw, p["w1_oihw"], window_strides=(1, 1), padding="SAME",
        dimension_numbers=("NCHW", "OIHW", "NCHW"))
    h = jnp.maximum(h + p["b1"][None, :, None, None], 0.0)
    o = jnp.einsum("nchw,oc->nohw", h, p["w2"]) + p["b2"][None, :, None, None]
    return o


# ---------------------------------- main ----------------------------------------
if __name__ == "__main__":
    key = jax.random.PRNGKey(0)
    kx, kp = jax.random.split(key)
    x = jax.random.normal(kx, (2, LAST_CHANNEL, 16, 16), jnp.float32)  # NCHW
    params = init_params(kp)

    out = base_model_forward(params, x)
    out = jax.block_until_ready(out)

    # sanity: shapes + numerical match against pure-JAX reference
    for head, classes in HEADS.items():
        got = out[0][head]
        assert got.shape == (2, classes, 16, 16), got.shape
        ref = _reference_head(x, params["per_head"][head])
        assert jnp.allclose(got, ref, atol=1e-4, rtol=1e-4), head

    print("KERNEL_OK")
</pallas_src>

<mosaic_0001>
module attributes {stable_mosaic.version = 11 : i64} {
  func.func @_fused_heads_kernel(%arg0: i32, %arg1: memref<8x512xf32, #tpu.memory_space<vmem>>, %arg2: memref<9x512xf32, #tpu.memory_space<vmem>>, %arg3: memref<96x72xf32, #tpu.memory_space<vmem>>, %arg4: memref<96x1xf32, #tpu.memory_space<vmem>>, %arg5: memref<7x96xf32, #tpu.memory_space<vmem>>, %arg6: memref<7x1xf32, #tpu.memory_space<vmem>>, %arg7: memref<7x512xf32, #tpu.memory_space<vmem>>, %arg8: memref<72x512xf32, #tpu.memory_space<vmem>>, %arg9: memref<96x512xf32, #tpu.memory_space<vmem>>) attributes {dimension_semantics = [#tpu.dimension_semantics<arbitrary>], iteration_bounds = array<i64: 1>, scalar_prefetch = 0 : i64, scratch_operands = 2 : i64, tpu.core_type = #tpu.core_type<tc>, window_params = [{pipeline_mode = #tpu.pipeline_mode<synchronous>, transform_indices = @transform_0, window_bounds = array<i64: 8, 512>}, {pipeline_mode = #tpu.pipeline_mode<synchronous>, transform_indices = @transform_1, window_bounds = array<i64: 9, 512>}, {pipeline_mode = #tpu.pipeline_mode<synchronous>, transform_indices = @transform_2, window_bounds = array<i64: 96, 72>}, {pipeline_mode = #tpu.pipeline_mode<synchronous>, transform_indices = @transform_3, window_bounds = array<i64: 96, 1>}, {pipeline_mode = #tpu.pipeline_mode<synchronous>, transform_indices = @transform_4, window_bounds = array<i64: 7, 96>}, {pipeline_mode = #tpu.pipeline_mode<synchronous>, transform_indices = @transform_5, window_bounds = array<i64: 7, 1>}, {pipeline_mode = #tpu.pipeline_mode<synchronous>, transform_indices = @transform_6, window_bounds = array<i64: 7, 512>}]} {
    %c0 = arith.constant 0 : index
    %c0_0 = arith.constant 0 : index
    %0 = vector.load %arg1[%c0, %c0_0] : memref<8x512xf32, #tpu.memory_space<vmem>>, vector<8x512xf32>
    %c17_i32 = arith.constant 17 : i32
    %1 = tpu.dynamic_rotate %0 by %c17_i32 dim 1 : vector<8x512xf32>, i32 -> vector<8x512xf32>
    %c0_1 = arith.constant 0 : index
    %c0_2 = arith.constant 0 : index
    %2 = vector.load %arg2[%c0_1, %c0_2] : memref<9x512xf32, #tpu.memory_space<vmem>>, vector<1x512xf32>
    %3 = vector.broadcast %2 : vector<1x512xf32> to vector<8x512xf32>
    %4 = arith.mulf %1, %3 : vector<8x512xf32>
    %c0_3 = arith.constant 0 : index
    %c0_4 = arith.constant 0 : index
    %5 = vector.load %arg8[%c0_3, %c0_4] : memref<72x512xf32, #tpu.memory_space<vmem>>, vector<8x512xf32>
    tpu.vector_store %arg8[%c0_3, %c0_4], %4 {strides = array<i32>} : memref<72x512xf32, #tpu.memory_space<vmem>>, vector<8x512xf32>,
    %c16_i32 = arith.constant 16 : i32
    %6 = tpu.dynamic_rotate %0 by %c16_i32 dim 1 : vector<8x512xf32>, i32 -> vector<8x512xf32>
    %c1 = arith.constant 1 : index
    %c0_5 = arith.constant 0 : index
    %7 = vector.load %arg2[%c1, %c0_5] : memref<9x512xf32, #tpu.memory_space<vmem>>, vector<1x512xf32>
    %8 = vector.broadcast %7 : vector<1x512xf32> to vector<8x512xf32>
    %9 = arith.mulf %6, %8 : vector<8x512xf32>
    %c8 = arith.constant 8 : index
    %c0_6 = arith.constant 0 : index
    %10 = vector.load %arg8[%c8, %c0_6] : memref<72x512xf32, #tpu.memory_space<vmem>>, vector<8x512xf32>
    tpu.vector_store %arg8[%c8, %c0_6], %9 {strides = array<i32>} : memref<72x512xf32, #tpu.memory_space<vmem>>, vector<8x512xf32>,
    %c15_i32 = arith.constant 15 : i32
    %11 = tpu.dynamic_rotate %0 by %c15_i32 dim 1 : vector<8x512xf32>, i32 -> vector<8x512xf32>
    %c2 = arith.constant 2 : index
    %c0_7 = arith.constant 0 : index
    %12 = vector.load %arg2[%c2, %c0_7] : memref<9x512xf32, #tpu.memory_space<vmem>>, vector<1x512xf32>
    %13 = vector.broadcast %12 : vector<1x512xf32> to vector<8x512xf32>
    %14 = arith.mulf %11, %13 : vector<8x512xf32>
    %c16 = arith.constant 16 : index
    %c0_8 = arith.constant 0 : index
    %15 = vector.load %arg8[%c16, %c0_8] : memref<72x512xf32, #tpu.memory_space<vmem>>, vector<8x512xf32>
    tpu.vector_store %arg8[%c16, %c0_8], %14 {strides = array<i32>} : memref<72x512xf32, #tpu.memory_space<vmem>>, vector<8x512xf32>,
    %c1_i32 = arith.constant 1 : i32
    %16 = tpu.dynamic_rotate %0 by %c1_i32 dim 1 : vector<8x512xf32>, i32 -> vector<8x512xf32>
    %c3 = arith.constant 3 : index
    %c0_9 = arith.constant 0 : index
    %17 = vector.load %arg2[%c3, %c0_9] : memref<9x512xf32, #tpu.memory_space<vmem>>, vector<1x512xf32>
    %18 = vector.broadcast %17 : vector<1x512xf32> to vector<8x512xf32>
    %19 = arith.mulf %16, %18 : vector<8x512xf32>
    %c24 = arith.constant 24 : index
    %c0_10 = arith.constant 0 : index
    %20 = vector.load %arg8[%c24, %c0_10] : memref<72x512xf32, #tpu.memory_space<vmem>>, vector<8x512xf32>
    tpu.vector_store %arg8[%c24, %c0_10], %19 {strides = array<i32>} : memref<72x512xf32, #tpu.memory_space<vmem>>, vector<8x512xf32>,
    %c4 = arith.constant 4 : index
    %c0_11 = arith.constant 0 : index
    %21 = vector.load %arg2[%c4, %c0_11] : memref<9x512xf32, #tpu.memory_space<vmem>>, vector<1x512xf32>
    %22 = vector.broadcast %21 : vector<1x512xf32> to vector<8x512xf32>
    %23 = arith.mulf %0, %22 : vector<8x512xf32>
    %c32 = arith.constant 32 : index
    %c0_12 = arith.constant 0 : index
    %24 = vector.load %arg8[%c32, %c0_12] : memref<72x512xf32, #tpu.memory_space<vmem>>, vector<8x512xf32>
    tpu.vector_store %arg8[%c32, %c0_12], %23 {strides = array<i32>} : memref<72x512xf32, #tpu.memory_space<vmem>>, vector<8x512xf32>,
    %c511_i32 = arith.constant 511 : i32
    %25 = tpu.dynamic_rotate %0 by %c511_i32 dim 1 : vector<8x512xf32>, i32 -> vector<8x512xf32>
    %c5 = arith.constant 5 : index
    %c0_13 = arith.constant 0 : index
    %26 = vector.load %arg2[%c5, %c0_13] : memref<9x512xf32, #tpu.memory_space<vmem>>, vector<1x512xf32>
    %27 = vector.broadcast %26 : vector<1x512xf32> to vector<8x512xf32>
    %28 = arith.mulf %25, %27 : vector<8x512xf32>
    %c40 = arith.constant 40 : index
    %c0_14 = arith.constant 0 : index
    %29 = vector.load %arg8[%c40, %c0_14] : memref<72x512xf32, #tpu.memory_space<vmem>>, vector<8x512xf32>
    tpu.vector_store %arg8[%c40, %c0_14], %28 {strides = array<i32>} : memref<72x512xf32, #tpu.memory_space<vmem>>, vector<8x512xf32>,
    %c497_i32 = arith.constant 497 : i32
    %30 = tpu.dynamic_rotate %0 by %c497_i32 dim 1 : vector<8x512xf32>, i32 -> vector<8x512xf32>
    %c6 = arith.constant 6 : index
    %c0_15 = arith.constant 0 : index
    %31 = vector.load %arg2[%c6, %c0_15] : memref<9x512xf32, #tpu.memory_space<vmem>>, vector<1x512xf32>
    %32 = vector.broadcast %31 : vector<1x512xf32> to vector<8x512xf32>
    %33 = arith.mulf %30, %32 : vector<8x512xf32>
    %c48 = arith.constant 48 : index
    %c0_16 = arith.constant 0 : index
    %34 = vector.load %arg8[%c48, %c0_16] : memref<72x512xf32, #tpu.memory_space<vmem>>, vector<8x512xf32>
    tpu.vector_store %arg8[%c48, %c0_16], %33 {strides = array<i32>} : memref<72x512xf32, #tpu.memory_space<vmem>>, vector<8x512xf32>,
    %c496_i32 = arith.constant 496 : i32
    %35 = tpu.dynamic_rotate %0 by %c496_i32 dim 1 : vector<8x512xf32>, i32 -> vector<8x512xf32>
    %c7 = arith.constant 7 : index
    %c0_17 = arith.constant 0 : index
    %36 = vector.load %arg2[%c7, %c0_17] : memref<9x512xf32, #tpu.memory_space<vmem>>, vector<1x512xf32>
    %37 = vector.broadcast %36 : vector<1x512xf32> to vector<8x512xf32>
    %38 = arith.mulf %35, %37 : vector<8x512xf32>
    %c56 = arith.constant 56 : index
    %c0_18 = arith.constant 0 : index
    %39 = vector.load %arg8[%c56, %c0_18] : memref<72x512xf32, #tpu.memory_space<vmem>>, vector<8x512xf32>
    tpu.vector_store %arg8[%c56, %c0_18], %38 {strides = array<i32>} : memref<72x512xf32, #tpu.memory_space<vmem>>, vector<8x512xf32>,
    %c495_i32 = arith.constant 495 : i32
    %40 = tpu.dynamic_rotate %0 by %c495_i32 dim 1 : vector<8x512xf32>, i32 -> vector<8x512xf32>
    %c8_19 = arith.constant 8 : index
    %c0_20 = arith.constant 0 : index
    %41 = vector.load %arg2[%c8_19, %c0_20] : memref<9x512xf32, #tpu.memory_space<vmem>>, vector<1x512xf32>
    %42 = vector.broadcast %41 : vector<1x512xf32> to vector<8x512xf32>
    %43 = arith.mulf %40, %42 : vector<8x512xf32>
    %c64 = arith.constant 64 : index
    %c0_21 = arith.constant 0 : index
    %44 = vector.load %arg8[%c64, %c0_21] : memref<72x512xf32, #tpu.memory_space<vmem>>, vector<8x512xf32>
    tpu.vector_store %arg8[%c64, %c0_21], %43 {strides = array<i32>} : memref<72x512xf32, #tpu.memory_space<vmem>>, vector<8x512xf32>,
    %c0_22 = arith.constant 0 : index
    %c0_23 = arith.constant 0 : index
    %45 = vector.load %arg3[%c0_22, %c0_23] : memref<96x72xf32, #tpu.memory_space<vmem>>, vector<96x72xf32>
    %c0_24 = arith.constant 0 : index
    %c0_25 = arith.constant 0 : index
    %46 = vector.load %arg8[%c0_24, %c0_25] : memref<72x512xf32, #tpu.memory_space<vmem>>, vector<72x512xf32>
    %cst = arith.constant dense<0.000000e+00> : vector<96x512xf32>
    %47 = tpu.matmul %45, %46, %cst {dimension_numbers = #tpu.dot_dimension_numbers<[1], [0], [0], [1], [0, 0, 1, 1], [], []>} : vector<96x72xf32>, vector<72x512xf32>, vector<96x512xf32> -> vector<96x512xf32>
    %c0_26 = arith.constant 0 : index
    %c0_27 = arith.constant 0 : index
    %48 = vector.load %arg4[%c0_26, %c0_27] : memref<96x1xf32, #tpu.memory_space<vmem>>, vector<96x1xf32>
    %49 = vector.broadcast %48 : vector<96x1xf32> to vector<96x512xf32>
    %50 = arith.addf %47, %49 : vector<96x512xf32>
    %cst_28 = arith.constant 0.000000e+00 : f32
    %51 = vector.broadcast %cst_28 : f32 to vector<96x512xf32>
    %52 = arith.maximumf %50, %51 : vector<96x512xf32>
    %c0_29 = arith.constant 0 : index
    %c0_30 = arith.constant 0 : index
    %53 = vector.load %arg9[%c0_29, %c0_30] : memref<96x512xf32, #tpu.memory_space<vmem>>, vector<96x512xf32>
    tpu.vector_store %arg9[%c0_29, %c0_30], %52 {strides = array<i32>} : memref<96x512xf32, #tpu.memory_space<vmem>>, vector<96x512xf32>,
    %c0_31 = arith.constant 0 : index
    %c0_32 = arith.constant 0 : index
    %54 = vector.load %arg5[%c0_31, %c0_32] : memref<7x96xf32, #tpu.memory_space<vmem>>, vector<7x96xf32>
    %c0_33 = arith.constant 0 : index
    %c0_34 = arith.constant 0 : index
    %55 = vector.load %arg9[%c0_33, %c0_34] : memref<96x512xf32, #tpu.memory_space<vmem>>, vector<96x512xf32>
    %cst_35 = arith.constant dense<0.000000e+00> : vector<7x512xf32>
    %56 = tpu.matmul %54, %55, %cst_35 {dimension_numbers = #tpu.dot_dimension_numbers<[1], [0], [0], [1], [0, 0, 1, 1], [], []>} : vector<7x96xf32>, vector<96x512xf32>, vector<7x512xf32> -> vector<7x512xf32>
    %c0_36 = arith.constant 0 : index
    %c0_37 = arith.constant 0 : index
    %57 = vector.load %arg6[%c0_36, %c0_37] : memref<7x1xf32, #tpu.memory_space<vmem>>, vector<7x1xf32>
    %58 = vector.broadcast %57 : vector<7x1xf32> to vector<7x512xf32>
    %59 = arith.addf %56, %58 : vector<7x512xf32>
    %c0_38 = arith.constant 0 : index
    %c0_39 = arith.constant 0 : index
    %60 = vector.load %arg7[%c0_38, %c0_39] : memref<7x512xf32, #tpu.memory_space<vmem>>, vector<7x512xf32>
    tpu.vector_store %arg7[%c0_38, %c0_39], %59 {strides = array<i32>} : memref<7x512xf32, #tpu.memory_space<vmem>>, vector<7x512xf32>,
    return
  }
  func.func @transform_0(%arg0: i32) -> (i32, i32) {
    %c0_i32 = arith.constant 0 : i32
    %c0_i32_0 = arith.constant 0 : i32
    %c0_i32_1 = arith.constant 0 : i32
    return %c0_i32, %c0_i32_0 : i32, i32
  }
  func.func @transform_1(%arg0: i32) -> (i32, i32) {
    %c0_i32 = arith.constant 0 : i32
    %c0_i32_0 = arith.constant 0 : i32
    %c0_i32_1 = arith.constant 0 : i32
    return %c0_i32, %c0_i32_0 : i32, i32
  }
  func.func @transform_2(%arg0: i32) -> (i32, i32) {
    %c0_i32 = arith.constant 0 : i32
    %c0_i32_0 = arith.constant 0 : i32
    %c0_i32_1 = arith.constant 0 : i32
    return %c0_i32, %c0_i32_0 : i32, i32
  }
  func.func @transform_3(%arg0: i32) -> (i32, i32) {
    %c0_i32 = arith.constant 0 : i32
    %c0_i32_0 = arith.constant 0 : i32
    %c0_i32_1 = arith.constant 0 : i32
    return %c0_i32, %c0_i32_0 : i32, i32
  }
  func.func @transform_4(%arg0: i32) -> (i32, i32) {
    %c0_i32 = arith.constant 0 : i32
    %c0_i32_0 = arith.constant 0 : i32
    %c0_i32_1 = arith.constant 0 : i32
    return %c0_i32, %c0_i32_0 : i32, i32
  }
  func.func @transform_5(%arg0: i32) -> (i32, i32) {
    %c0_i32 = arith.constant 0 : i32
    %c0_i32_0 = arith.constant 0 : i32
    %c0_i32_1 = arith.constant 0 : i32
    return %c0_i32, %c0_i32_0 : i32, i32
  }
  func.func @transform_6(%arg0: i32) -> (i32, i32) {
    %c0_i32 = arith.constant 0 : i32
    %c0_i32_0 = arith.constant 0 : i32
    %c0_i32_1 = arith.constant 0 : i32
    return %c0_i32, %c0_i32_0 : i32, i32
  }
}

</mosaic_0001>

<bundles_post_ra>
// kernel: tpu_custom_call.1
= control target key start
LH: loop header
LB: loop body
LE: loop exit
PB: predicated region body
PF: predicated region fallthrough
CT: control target
= control target key end

     0   :  { %s1227_s25 = smov 111   ;;  %s1668_s0 = inlined_call_operand.vmem [shape: f32[8,512], index: 0, kind: input, shape index: {}]   ;;  %s1669_s1 = inlined_call_operand.vmem [shape: f32[9,512], index: 1, kind: input, shape index: {}]   ;;  %s1670_s2 = inlined_call_operand.vmem [shape: f32[96,72], index: 2, kind: input, shape index: {}]   ;;  %s1671_s3 = inlined_call_operand.vmem [shape: f32[96,1], index: 3, kind: input, shape index: {}]   ;;  %s1672_s4 = inlined_call_operand.vmem [shape: f32[7,96], index: 4, kind: input, shape index: {}]   ;;  %s1673_s5 = inlined_call_operand.vmem [shape: f32[7,1], index: 5, kind: input, shape index: {}]   ;;  %s1674_s6 = inlined_call_operand.hbm [shape: f32[7,512], index: 6, kind: output, shape index: {}]  }
   0x1   :  { %v1276_v0 = vld [vmem:[%s1668_s0 + $0x10] sm:$0xff]  ;;  %v1281_v1 = vld [vmem:[%s1668_s0] sm:$0xff]  ;;  %v1288_v2 = vld [vmem:[%s1668_s0 + $0x18] sm:$0xff] }
   0x2   :  { %372 = vrot.lane.b32.xlu1 %v1276_v0, %s1227_s25  ;;  %368 = vrot.lane.b32.xlu0 %v1281_v1, %s1227_s25  ;;  %v1293_v3 = vld [vmem:[%s1668_s0 + $0x8] sm:$0xff] }
   0x3   :  { %11 = vsyncpa [#allocation5], 0  ;;  %s1228_s30 = smov 112   ;;  %s1229_s7 = smov 113   ;;  %v1234_v4 = vmov 0.0   ;;  %v471_v5 = vld [vmem:[%s1671_s3 + $0x58] sm:$0xff]  ;;  %v36_v12 = vlaneseq }
   0x4   :  { %s1230_s0 = smov 127   ;;  %s1231_s8 = smov 1   ;;  %633 = vmatprep.mubr.f32.mxu0 %v1234_v4  ;;  %770 = vmatprep.mubr.f32.mxu1 %v1234_v4  ;;  %v470_v6 = vld [vmem:[%s1671_s3 + $0x50] sm:$0xff]  ;;  %v1236_v7 = vmov 0   ;;  %v468_v8 = vld [vmem:[%s1671_s3 + $0x40] sm:$0xff]  ;;  %v469_v9 = vld [vmem:[%s1671_s3 + $0x48] sm:$0xff] }
   0x5   :  { %s1232_s9 = smov 15   ;;  %s1233_s10 = smov 16   ;;  %1203 = vset.pattern.permute.xlu0 %v1236_v7  ;;  %1204 = vset.pattern.permute.xlu1 %v1236_v7  ;;  %v466_v10 = vld [vmem:[%s1671_s3 + $0x30] sm:$0xff]  ;;  %v467_v11 = vld [vmem:[%s1671_s3 + $0x38] sm:$0xff]  ;;  %v464_v13 = vld [vmem:[%s1671_s3 + $0x20] sm:$0xff]  ;;  %v46_v15 = vshrl.u32 %v36_v12, 7 }
   0x6   :  { %374 = vrot.lane.b32.xlu1 %v1288_v2, %s1227_s25  ;;  %370 = vrot.lane.b32.xlu0 %v1293_v3, %s1227_s25  ;;  %s1235_s11 = smov 17   ;;  %v465_v14 = vld [vmem:[%s1671_s3 + $0x28] sm:$0xff]  ;;  %v1351_v16 = vand.u32 127, %v36_v12  ;;  %v462_v17 = vld [vmem:[%s1671_s3 + $0x10] sm:$0xff]  ;;  %vm532_vm8 = vcmask 588800   ;;  %vm994_vm9 = vcmask 785408  }
   0x7   :  { %v463_v18 = vld [vmem:[%s1671_s3 + $0x18] sm:$0xff]  ;;  %v1359_v19 = vsub.s32 1, %v46_v15  ;;  %v1361_v20 = vsub.s32 3, %v46_v15  ;;  %v1363_v21 = vsub.s32 0, %v46_v15  ;;  %v1365_v22 = vsub.s32 2, %v46_v15  ;;  %v460_v26 = vld [vmem:[%s1671_s3] sm:$0xff] }
   0x8   :  { %v1165_v23 = vld [vmem:[%s1669_s1 + $0x20] ss:$8 sm:$0xf]  ;;  %vm376_vm0 = vcmp.lt.s32.totalorder %v1351_v16, 111  ;;  %vm332_vm1 = vcmp.lt.s32.totalorder %v1351_v16, 112  ;;  %vm288_vm2 = vcmp.lt.s32.totalorder %v1351_v16, 113 }
   0x9   :  { %v461_v27 = vld [vmem:[%s1671_s3 + $0x8] sm:$0xff]  ;;  %v391_v28 = vrot.slane %v1165_v23, %v1359_v19  ;;  %v399_v29 = vrot.slane %v1165_v23, %v1361_v20  ;;  %v387_v30 = vrot.slane %v1165_v23, %v1363_v21  ;;  %v395_v31 = vrot.slane %v1165_v23, %v1365_v22  ;;  %v988_v42 = vld [vmem:[%s1673_s5] sm:$0x7f]  ;;  %s1237_s26 = smov [#allocation4]  }
   0xa   :  { %326 = vrot.lane.b32.xlu1 %v1293_v3, %s1228_s30  ;;  %324 = vrot.lane.b32.xlu0 %v1281_v1, %s1228_s30  ;;  %v1164_v44 = vld [vmem:[%s1669_s1 + $0x7] ss:$8 sm:$0xf]  ;;  %v1163_v61 = vld [vmem:[%s1669_s1 + $0x6] ss:$8 sm:$0xf] }
   0xb   :  { %v355_v46 = vrot.slane %v1164_v44, %v1361_v20  ;;  %v347_v47 = vrot.slane %v1164_v44, %v1359_v19  ;;  %v351_v48 = vrot.slane %v1164_v44, %v1365_v22  ;;  %v343_v49 = vrot.slane %v1164_v44, %v1363_v21  ;;  %s1150_s27 = sshll.u32 %s1237_s26, 4  ;;  %s1151_s27 = int_to_ptr.vmem [resolvable:$true] %s1150_s27 }
   0xc   :  { %v311_v63 = vrot.slane %v1163_v61, %v1361_v20  ;;  %v299_v7 = vrot.slane %v1163_v61, %v1363_v21  ;;  %vm244_vm3 = vcmp.lt.s32.totalorder %v1351_v16, 127  ;;  %vm169_vm4 = vcmp.lt.s32.totalorder %v1351_v16, 1  ;;  %p1210_p1 = scmp.lt.s32.totalorder %s1151_s27, %s1151_s27 }
   0xd   :  { %vm125_vm5 = vcmp.lt.s32.totalorder %v1351_v16, 15  ;;  %vm81_vm6 = vcmp.lt.s32.totalorder %v1351_v16, 16  ;;  %vm38_vm7 = vcmp.lt.s32.totalorder %v1351_v16, 17  ;;  %v413_v16 = vld [vmem:[%s1670_s2 + $0x8] sm:$0xff] }
   0xe   :  { %330 = vrot.lane.b32.xlu1 %v1288_v2, %s1228_s30  ;;  %328 = vrot.lane.b32.xlu0 %v1276_v0, %s1228_s30 }
  0x12   :  { %282 = vrot.lane.b32.xlu1 %v1293_v3, %s1229_s7  ;;  %280 = vrot.lane.b32.xlu0 %v1281_v1, %s1229_s7 }
  0x16   :  { %286 = vrot.lane.b32.xlu1 %v1288_v2, %s1229_s7  ;;  %284 = vrot.lane.b32.xlu0 %v1276_v0, %s1229_s7 }
  0x1a   :  { %238 = vrot.lane.b32.xlu1 %v1293_v3, %s1230_s0  ;;  %236 = vrot.lane.b32.xlu0 %v1281_v1, %s1230_s0 }
  0x1e   :  { %242 = vrot.lane.b32.xlu1 %v1288_v2, %s1230_s0  ;;  %240 = vrot.lane.b32.xlu0 %v1276_v0, %s1230_s0 }
  0x22   :  { %163 = vrot.lane.b32.xlu1 %v1293_v3, %s1231_s8  ;;  %161 = vrot.lane.b32.xlu0 %v1281_v1, %s1231_s8 }
  0x26   :  { %167 = vrot.lane.b32.xlu1 %v1288_v2, %s1231_s8  ;;  %165 = vrot.lane.b32.xlu0 %v1276_v0, %s1231_s8 }
  0x2a   :  { %119 = vrot.lane.b32.xlu1 %v1293_v3, %s1232_s9  ;;  %117 = vrot.lane.b32.xlu0 %v1281_v1, %s1232_s9 }
  0x2e   :  { %123 = vrot.lane.b32.xlu1 %v1288_v2, %s1232_s9  ;;  %121 = vrot.lane.b32.xlu0 %v1276_v0, %s1232_s9 }
  0x32   :  { %75 = vrot.lane.b32.xlu1 %v1293_v3, %s1233_s10  ;;  %73 = vrot.lane.b32.xlu0 %v1281_v1, %s1233_s10 }
  0x36   :  { %79 = vrot.lane.b32.xlu1 %v1288_v2, %s1233_s10  ;;  %77 = vrot.lane.b32.xlu0 %v1276_v0, %s1233_s10 }
  0x3a   :  { %30 = vrot.lane.b32.xlu1 %v1293_v3, %s1235_s11  ;;  %28 = vrot.lane.b32.xlu0 %v1281_v1, %s1235_s11 }
  0x3e   :  { %34 = vrot.lane.b32.xlu1 %v1288_v2, %s1235_s11  ;;  %32 = vrot.lane.b32.xlu0 %v1276_v0, %s1235_s11 }
  0x42   :  { %529 = vperm.xlu0 %1203, %v471_v5   ;;  %524 = vperm.xlu1 %1204, %v470_v6   ;;  %v303_v5 = vrot.slane %v1163_v61, %v1359_v19  ;;  %v307_v6 = vrot.slane %v1163_v61, %v1365_v22 }
  0x46   :  { %514 = vperm.xlu0 %1203, %v468_v8   ;;  %519 = vperm.xlu1 %1204, %v469_v9  }
  0x4a   :  { %504 = vperm.xlu0 %1203, %v466_v10   ;;  %509 = vperm.xlu1 %1204, %v467_v11  }
  0x4e   :  { %494 = vperm.xlu0 %1203, %v464_v13   ;;  %499 = vperm.xlu1 %1204, %v465_v14  }
  0x52   :  { %484 = vperm.xlu0 %1203, %v462_v17   ;;  %489 = vperm.xlu1 %1204, %v463_v18   ;;  %v1161_v18 = vld [vmem:[%s1669_s1 + $0x4] ss:$8 sm:$0xf] }
  0x56   :  { %474 = vperm.xlu0 %1203, %v460_v26   ;;  %479 = vperm.xlu1 %1204, %v461_v27   ;;  %v1160_v27 = vld [vmem:[%s1669_s1 + $0x3] ss:$8 sm:$0xf] }
  0x5a   :  { %991 = vperm.xlu1 %1204, %v988_v42  }
  0x74   :  { %v373_v24 = vpop.permute.xlu1 %372  ;;  %v369_v25 = vpop.permute.xlu0 %368 }
  0x78   :  { %v375_v32 = vpop.permute.xlu1 %374  ;;  %v371_v33 = vpop.permute.xlu0 %370 }
  0x79   :  { %v377_v34 = vsel %vm376_vm0, %v373_v24, %v375_v32  ;;  %v379_v35 = vsel %vm376_vm0, %v369_v25, %v371_v33  ;;  %v378_v36 = vsel %vm376_vm0, %v371_v33, %v373_v24  ;;  %v380_v37 = vsel %vm376_vm0, %v375_v32, %v369_v25  ;;  %v1162_v25 = vld [vmem:[%s1669_s1 + $0x5] ss:$8 sm:$0xf] }
  0x7a   :  { %v405_v38 = vmul.f32 %v391_v28, %v378_v36  ;;  %v407_v39 = vmul.f32 %v399_v29, %v380_v37  ;;  %v404_v40 = vmul.f32 %v387_v30, %v379_v35  ;;  %v406_v41 = vmul.f32 %v395_v31, %v377_v34 }
  0x7b   :  { %v215_v28 = vrot.slane %v1161_v18, %v1359_v19  ;;  %v267_v29 = vrot.slane %v1162_v25, %v1361_v20  ;;  %v259_v30 = vrot.slane %v1162_v25, %v1359_v19  ;;  %v263_v31 = vrot.slane %v1162_v25, %v1365_v22 }
  0x7c   :  { %v327_v43 = vpop.permute.xlu1 %326  ;;  %583 = vmatprep.subr.mxu0 %v405_v38  ;;  %720 = vmatprep.subr.mxu1 %v407_v39  ;;  %v325_v45 = vpop.permute.xlu0 %324  ;;  %v223_v32 = vrot.slane %v1161_v18, %v1361_v20  ;;  %v255_v33 = vrot.slane %v1162_v25, %v1363_v21  ;;  %v211_v34 = vrot.slane %v1161_v18, %v1363_v21 }
  0x7d   :  { %584 = vmatpush1.msra.mxu0 %v404_v40  ;;  %721 = vmatpush1.msra.mxu1 %v406_v41  ;;  %v335_v50 = vsel %vm332_vm1, %v325_v45, %v327_v43  ;;  %v219_v35 = vrot.slane %v1161_v18, %v1365_v22  ;;  %v184_v39 = vrot.slane %v1160_v27, %v1359_v19 }
  0x7e   :  { %v360_v59 = vmul.f32 %v343_v49, %v335_v50  ;;  %v228_v49 = vmul.f32 %v211_v34, %v1281_v1  ;;  %v43_v34 = vld [vmem:[%s1669_s1] ss:$8 sm:$0xf] }
  0x7f   :  { %v230_v50 = vmul.f32 %v219_v35, %v1276_v0  ;;  %v1159_v0 = vld [vmem:[%s1669_s1 + $0x2] ss:$8 sm:$0xf] }
  0x80   :  { %v331_v51 = vpop.permute.xlu1 %330  ;;  %v329_v52 = vpop.permute.xlu0 %328 }
  0x81   :  { %v336_v53 = vsel %vm332_vm1, %v331_v51, %v325_v45  ;;  %v333_v54 = vsel %vm332_vm1, %v329_v52, %v331_v51  ;;  %v334_v55 = vsel %vm332_vm1, %v327_v43, %v329_v52  ;;  %v229_v43 = vmul.f32 %v215_v28, %v1293_v3 }
  0x82   :  { %v363_v56 = vmul.f32 %v355_v46, %v336_v53  ;;  %v361_v57 = vmul.f32 %v347_v47, %v334_v55  ;;  %v362_v58 = vmul.f32 %v351_v48, %v333_v54  ;;  %v231_v47 = vmul.f32 %v223_v32, %v1288_v2 }
  0x83   :  { %v180_v3 = vrot.slane %v1160_v27, %v1363_v21  ;;  %v188_v2 = vrot.slane %v1160_v27, %v1365_v22  ;;  %v192_v55 = vrot.slane %v1160_v27, %v1361_v20 }
  0x84   :  { %v283_v60 = vpop.permute.xlu1 %282  ;;  %585 = vmatprep.subr.mxu0 %v361_v57  ;;  %722 = vmatprep.subr.mxu1 %v363_v56  ;;  %v281_v62 = vpop.permute.xlu0 %280 }
  0x85   :  { %586 = vmatpush1.msra.mxu0 %v360_v59  ;;  %723 = vmatpush1.msra.mxu1 %v362_v58  ;;  %v291_v8 = vsel %vm288_vm2, %v281_v62, %v283_v60 }
  0x86   :  { %v316_v23 = vmul.f32 %v299_v7, %v291_v8 }
  0x88   :  { %v287_v9 = vpop.permute.xlu1 %286  ;;  %v285_v10 = vpop.permute.xlu0 %284 }
  0x89   :  { %v292_v11 = vsel %vm288_vm2, %v287_v9, %v281_v62  ;;  %v289_v12 = vsel %vm288_vm2, %v285_v10, %v287_v9  ;;  %v290_v13 = vsel %vm288_vm2, %v283_v60, %v285_v10  ;;  %v136_v9 = vrot.slane %v1159_v0, %v1363_v21 }
  0x8a   :  { %v319_v14 = vmul.f32 %v311_v63, %v292_v11  ;;  %v317_v15 = vmul.f32 %v303_v5, %v290_v13  ;;  %v318_v17 = vmul.f32 %v307_v6, %v289_v12  ;;  %v140_v63 = vrot.slane %v1159_v0, %v1359_v19  ;;  %v1158_v12 = vld [vmem:[%s1669_s1 + $0x1] ss:$8 sm:$0xf] }
  0x8b   :  { %v144_v10 = vrot.slane %v1159_v0, %v1365_v22  ;;  %v148_v11 = vrot.slane %v1159_v0, %v1361_v20  ;;  %v100_v32 = vrot.slane %v1158_v12, %v1365_v22  ;;  %v416_v0 = vld [vmem:[%s1670_s2 + $0x20] sm:$0xff] }
  0x8c   :  { %v239_v24 = vpop.permute.xlu1 %238  ;;  %587 = vmatprep.subr.mxu0 %v317_v15  ;;  %724 = vmatprep.subr.mxu1 %v319_v14  ;;  %v237_v26 = vpop.permute.xlu0 %236 }
  0x8d   :  { %588 = vmatpush1.msra.mxu0 %v316_v23  ;;  %725 = vmatpush1.msra.mxu1 %v318_v17  ;;  %v247_v36 = vsel %vm244_vm3, %v237_v26, %v239_v24 }
  0x8e   :  { %v272_v48 = vmul.f32 %v255_v33, %v247_v36  ;;  %v104_v33 = vrot.slane %v1158_v12, %v1361_v20 }
  0x90   :  { %v243_v37 = vpop.permute.xlu1 %242  ;;  %v241_v38 = vpop.permute.xlu0 %240 }
  0x91   :  { %v248_v40 = vsel %vm244_vm3, %v243_v37, %v237_v26  ;;  %v245_v41 = vsel %vm244_vm3, %v241_v38, %v243_v37  ;;  %v246_v42 = vsel %vm244_vm3, %v239_v24, %v241_v38  ;;  %v96_v26 = vrot.slane %v1158_v12, %v1359_v19 }
  0x92   :  { %v275_v44 = vmul.f32 %v267_v29, %v248_v40  ;;  %v273_v45 = vmul.f32 %v259_v30, %v246_v42  ;;  %v274_v46 = vmul.f32 %v263_v31, %v245_v41  ;;  %v92_v31 = vrot.slane %v1158_v12, %v1363_v21 }
  0x94   :  { %v164_v51 = vpop.permute.xlu1 %163  ;;  %589 = vmatprep.subr.mxu0 %v273_v45  ;;  %726 = vmatprep.subr.mxu1 %v275_v44  ;;  %v162_v52 = vpop.permute.xlu0 %161 }
  0x95   :  { %v172_v53 = vsel %vm169_vm4, %v162_v52, %v164_v51  ;;  %590 = vmatpush1.msra.mxu0 %v272_v48  ;;  %727 = vmatpush1.msra.mxu1 %v274_v46  ;;  %v48_v48 = vrot.slane %v43_v34, %v1363_v21  ;;  %v412_v21 = vld [vmem:[%s1670_s2] sm:$0xff] }
  0x96   :  { %v198_v54 = vmul.f32 %v184_v39, %v172_v53  ;;  %591 = vmatprep.subr.mxu0 %v229_v43  ;;  %728 = vmatprep.subr.mxu1 %v231_v47  ;;  %v52_v43 = vrot.slane %v43_v34, %v1359_v19 }
  0x97   :  { %592 = vmatpush1.msra.mxu0 %v228_v49  ;;  %729 = vmatpush1.msra.mxu1 %v230_v50  ;;  %v56_v49 = vrot.slane %v43_v34, %v1365_v22  ;;  %v60_v50 = vrot.slane %v43_v34, %v1361_v20  ;;  %v414_v20 = vld [vmem:[%s1670_s2 + $0x10] sm:$0xff]  ;;  %v415_v22 = vld [vmem:[%s1670_s2 + $0x18] sm:$0xff] }
  0x98   :  { %v168_v1 = vpop.permute.xlu1 %167  ;;  %v166_v56 = vpop.permute.xlu0 %165  ;;  %593 = vmatprep.subr.mxu0 %v198_v54 }
  0x99   :  { %v173_v57 = vsel %vm169_vm4, %v168_v1, %v162_v52  ;;  %v170_v58 = vsel %vm169_vm4, %v166_v56, %v168_v1  ;;  %v171_v59 = vsel %vm169_vm4, %v164_v51, %v166_v56  ;;  %v417_v1 = vld [vmem:[%s1670_s2 + $0x28] sm:$0xff]  ;;  %v418_v56 = vld [vmem:[%s1670_s2 + $0x30] sm:$0xff] }
  0x9a   :  { %v197_v60 = vmul.f32 %v180_v3, %v173_v57  ;;  %v199_v61 = vmul.f32 %v188_v2, %v171_v59  ;;  %v200_v62 = vmul.f32 %v192_v55, %v170_v58  ;;  %v419_v57 = vld [vmem:[%s1670_s2 + $0x38] sm:$0xff]  ;;  %v420_v58 = vld [vmem:[%s1670_s2 + $0x40] sm:$0xff]  ;;  %v421_v59 = vld [vmem:[%s1670_s2 + $0x48] sm:$0xff] }
  0x9c   :  { %v120_v5 = vpop.permute.xlu1 %119  ;;  %730 = vmatprep.subr.mxu1 %v200_v62  ;;  %v118_v6 = vpop.permute.xlu0 %117  ;;  %594 = vmatpush1.msra.mxu0 %v197_v60  ;;  %v422_v60 = vld [vmem:[%s1670_s2 + $0x50] sm:$0xff] }
  0x9d   :  { %v128_v7 = vsel %vm125_vm5, %v118_v6, %v120_v5  ;;  %731 = vmatpush1.msra.mxu1 %v199_v61  ;;  %v423_v61 = vld [vmem:[%s1670_s2 + $0x58] sm:$0xff] }
  0x9e   :  { %v154_v8 = vmul.f32 %v140_v63, %v128_v7 }
  0xa0   :  { %v124_v13 = vpop.permute.xlu1 %123  ;;  %v122_v14 = vpop.permute.xlu0 %121  ;;  %595 = vmatprep.subr.mxu0 %v154_v8 }
  0xa1   :  { %v129_v15 = vsel %vm125_vm5, %v124_v13, %v118_v6  ;;  %v126_v17 = vsel %vm125_vm5, %v122_v14, %v124_v13  ;;  %v127_v18 = vsel %vm125_vm5, %v120_v5, %v122_v14 }
  0xa2   :  { %v153_v23 = vmul.f32 %v136_v9, %v129_v15  ;;  %v155_v24 = vmul.f32 %v144_v10, %v127_v18  ;;  %v156_v25 = vmul.f32 %v148_v11, %v126_v17 }
  0xa4   :  { %v76_v27 = vpop.permute.xlu1 %75  ;;  %732 = vmatprep.subr.mxu1 %v156_v25  ;;  %v74_v28 = vpop.permute.xlu0 %73  ;;  %596 = vmatpush1.msra.mxu0 %v153_v23 }
  0xa5   :  { %v84_v29 = vsel %vm81_vm6, %v74_v28, %v76_v27  ;;  %733 = vmatpush1.msra.mxu1 %v155_v24 }
  0xa6   :  { %v110_v30 = vmul.f32 %v96_v26, %v84_v29 }
  0xa8   :  { %v80_v35 = vpop.permute.xlu1 %79  ;;  %v78_v36 = vpop.permute.xlu0 %77  ;;  %597 = vmatprep.subr.mxu0 %v110_v30 }
  0xa9   :  { %v85_v37 = vsel %vm81_vm6, %v80_v35, %v74_v28  ;;  %v82_v38 = vsel %vm81_vm6, %v78_v36, %v80_v35  ;;  %v83_v39 = vsel %vm81_vm6, %v76_v27, %v78_v36 }
  0xaa   :  { %v109_v40 = vmul.f32 %v92_v31, %v85_v37  ;;  %v111_v41 = vmul.f32 %v100_v32, %v83_v39  ;;  %v112_v42 = vmul.f32 %v104_v33, %v82_v38 }
  0xac   :  { %v31_v44 = vpop.permute.xlu1 %30  ;;  %734 = vmatprep.subr.mxu1 %v112_v42  ;;  %v29_v45 = vpop.permute.xlu0 %28  ;;  %598 = vmatpush1.msra.mxu0 %v109_v40 }
  0xad   :  { %v41_v46 = vsel %vm38_vm7, %v29_v45, %v31_v44  ;;  %735 = vmatpush1.msra.mxu1 %v111_v41 }
  0xae   :  { %v66_v47 = vmul.f32 %v52_v43, %v41_v46 }
  0xb0   :  { %v35_v51 = vpop.permute.xlu1 %34  ;;  %v33_v52 = vpop.permute.xlu0 %32  ;;  %599 = vmatprep.subr.mxu0 %v66_v47 }
  0xb1   :  { %v42_v19 = vsel %vm38_vm7, %v35_v51, %v29_v45  ;;  %v39_v53 = vsel %vm38_vm7, %v33_v52, %v35_v51  ;;  %v40_v3 = vsel %vm38_vm7, %v31_v44, %v33_v52 }
  0xb2   :  { %v65_v54 = vmul.f32 %v48_v48, %v42_v19  ;;  %v67_v2 = vmul.f32 %v56_v49, %v40_v3  ;;  %v68_v55 = vmul.f32 %v60_v50, %v39_v53 }
  0xb4   :  { %600 = vmatpush1.msra.mxu0 %v65_v54  ;;  %736 = vmatprep.subr.mxu1 %v68_v55 }
  0xb5   :  { %1166 = vmatmul.mubr.msk.f32.vlgmr.msra.gmra.mxu0 %vm532_vm8, %v412_v21  ;;  %737 = vmatpush1.msra.mxu1 %v67_v2 }
  0xb6   :  { %1178 = vmatmul.mubr.msk.f32.vlgmr.msra.gmra.mxu1 %vm532_vm8, %v412_v21  ;;  %639 = vmatprep.mubr.f32.mxu0 %v1234_v4 }
  0xb7   :  { %776 = vmatprep.mubr.f32.mxu1 %v1234_v4 }
  0xb9   :  { %1167 = vmatmul.mubr.msk.f32.gmra.mxu0 %vm532_vm8, %v413_v16 }
  0xba   :  { %1179 = vmatmul.mubr.msk.f32.gmra.mxu1 %vm532_vm8, %v413_v16  ;;  %645 = vmatprep.mubr.f32.mxu0 %v1234_v4 }
  0xbb   :  { %782 = vmatprep.mubr.f32.mxu1 %v1234_v4 }
  0xbd   :  { %1168 = vmatmul.mubr.msk.f32.gmra.mxu0 %vm532_vm8, %v414_v20  ;;  %v525_v39 = vpop.permute.xlu1 %524  ;;  %v530_v42 = vpop.permute.xlu0 %529 }
  0xbe   :  { %1180 = vmatmul.mubr.msk.f32.gmra.mxu1 %vm532_vm8, %v414_v20  ;;  %651 = vmatprep.mubr.f32.mxu0 %v1234_v4 }
  0xbf   :  { %788 = vmatprep.mubr.f32.mxu1 %v1234_v4 }
  0xc1   :  { %1169 = vmatmul.mubr.msk.f32.gmra.mxu0 %vm532_vm8, %v415_v22  ;;  %v520_v47 = vpop.permute.xlu1 %519  ;;  %v515_v50 = vpop.permute.xlu0 %514 }
  0xc2   :  { %1181 = vmatmul.mubr.msk.f32.gmra.mxu1 %vm532_vm8, %v415_v22  ;;  %657 = vmatprep.mubr.f32.mxu0 %v1234_v4 }
  0xc3   :  { %794 = vmatprep.mubr.f32.mxu1 %v1234_v4 }
  0xc5   :  { %1170 = vmatmul.mubr.msk.f32.gmra.mxu0 %vm532_vm8, %v416_v0  ;;  %v510_v3 = vpop.permute.xlu1 %509  ;;  %v505_v55 = vpop.permute.xlu0 %504 }
  0xc6   :  { %1182 = vmatmul.mubr.msk.f32.gmra.mxu1 %vm532_vm8, %v416_v0  ;;  %663 = vmatprep.mubr.f32.mxu0 %v1234_v4 }
  0xc7   :  { %800 = vmatprep.mubr.f32.mxu1 %v1234_v4 }
  0xc9   :  { %1171 = vmatmul.mubr.msk.f32.gmra.mxu0 %vm532_vm8, %v417_v1 }
  0xca   :  { %1183 = vmatmul.mubr.msk.f32.gmra.mxu1 %vm532_vm8, %v417_v1  ;;  %669 = vmatprep.mubr.f32.mxu0 %v1234_v4 }
  0xcb   :  { %806 = vmatprep.mubr.f32.mxu1 %v1234_v4 }
  0xcd   :  { %1172 = vmatmul.mubr.msk.f32.gmra.mxu0 %vm532_vm8, %v418_v56 }
  0xce   :  { %1184 = vmatmul.mubr.msk.f32.gmra.mxu1 %vm532_vm8, %v418_v56  ;;  %675 = vmatprep.mubr.f32.mxu0 %v1234_v4 }
  0xcf   :  { %812 = vmatprep.mubr.f32.mxu1 %v1234_v4 }
  0xd1   :  { %1173 = vmatmul.mubr.msk.f32.gmra.mxu0 %vm532_vm8, %v419_v57 }
  0xd2   :  { %1185 = vmatmul.mubr.msk.f32.gmra.mxu1 %vm532_vm8, %v419_v57  ;;  %681 = vmatprep.mubr.f32.mxu0 %v1234_v4 }
  0xd3   :  { %818 = vmatprep.mubr.f32.mxu1 %v1234_v4 }
  0xd5   :  { %1174 = vmatmul.mubr.msk.f32.gmra.mxu0 %vm532_vm8, %v420_v58 }
  0xd6   :  { %1186 = vmatmul.mubr.msk.f32.gmra.mxu1 %vm532_vm8, %v420_v58  ;;  %687 = vmatprep.mubr.f32.mxu0 %v1234_v4 }
  0xd7   :  { %824 = vmatprep.mubr.f32.mxu1 %v1234_v4 }
  0xd9   :  { %1175 = vmatmul.mubr.msk.f32.gmra.mxu0 %vm532_vm8, %v421_v59 }
  0xda   :  { %1187 = vmatmul.mubr.msk.f32.gmra.mxu1 %vm532_vm8, %v421_v59  ;;  %693 = vmatprep.mubr.f32.mxu0 %v1234_v4 }
  0xdb   :  { %830 = vmatprep.mubr.f32.mxu1 %v1234_v4 }
  0xdd   :  { %1176 = vmatmul.mubr.msk.f32.gmra.mxu0 %vm532_vm8, %v422_v60 }
  0xde   :  { %1188 = vmatmul.mubr.msk.f32.gmra.mxu1 %vm532_vm8, %v422_v60  ;;  %699 = vmatprep.mubr.f32.mxu0 %v1234_v4 }
  0xdf   :  { %836 = vmatprep.mubr.f32.mxu1 %v1234_v4 }
  0xe1   :  { %1177 = vmatmul.mubr.msk.f32.gmra.mxu0 %vm532_vm8, %v423_v61 }
  0xe2   :  { %1189 = vmatmul.mubr.msk.f32.gmra.mxu1 %vm532_vm8, %v423_v61  ;;  %1062 = vmatprep.mubr.f32.mxu0 %v1234_v4 }
  0xe3   :  { %1133 = vmatprep.mubr.f32.mxu1 %v1234_v4 }
 0x175   :  { %v1575_v62 = vpop.f32.mrf.mxu0 }
 0x176   :  { %1675 = vst [vmem:[#allocation7_spill] sm:$0xff] %v1575_v62  ;;  %v1577_v63 = vpop.f32.mrf.mxu1 }
 0x177   :  { %1676 = vst [vmem:[#allocation8_spill] sm:$0xff] %v1577_v63  ;;  %v1579_v5 = vpop.f32.mrf.mxu0  ;;  %v500_v63 = vpop.permute.xlu1 %499 }
 0x178   :  { %1677 = vst [vmem:[#allocation9_spill] sm:$0xff] %v1579_v5  ;;  %v1581_v6 = vpop.f32.mrf.mxu1 }
 0x179   :  { %1678 = vst [vmem:[#allocation10_spill] sm:$0xff] %v1581_v6  ;;  %v1583_v7 = vpop.f32.mrf.mxu0 }
 0x17a   :  { %1679 = vst [vmem:[#allocation11_spill] sm:$0xff] %v1583_v7  ;;  %v1585_v8 = vpop.f32.mrf.mxu1 }
 0x17b   :  { %1680 = vst [vmem:[#allocation12_spill] sm:$0xff] %v1585_v8  ;;  %v1587_v9 = vpop.f32.mrf.mxu0 }
 0x17c   :  { %1681 = vst [vmem:[#allocation13_spill] sm:$0xff] %v1587_v9  ;;  %v1589_v10 = vpop.f32.mrf.mxu1 }
 0x17d   :  { %1682 = vst [vmem:[#allocation14_spill] sm:$0xff] %v1589_v10  ;;  %v1591_v11 = vpop.f32.mrf.mxu0 }
 0x17e   :  { %v1593_v12 = vpop.f32.mrf.mxu1 }
 0x17f   :  { %1683 = vst [vmem:[#allocation15_spill] sm:$0xff] %v1593_v12  ;;  %v1595_v4 = vpop.f32.mrf.mxu0 }
 0x180   :  { %v1597_v13 = vpop.f32.mrf.mxu1 }
 0x181   :  { %v1599_v14 = vpop.f32.mrf.mxu0 }
 0x182   :  { %v1601_v15 = vpop.f32.mrf.mxu1 }
 0x183   :  { %v1603_v17 = vpop.f32.mrf.mxu0 }
 0x184   :  { %v1605_v18 = vpop.f32.mrf.mxu1 }
 0x185   :  { %v1607_v23 = vpop.f32.mrf.mxu0 }
 0x186   :  { %v1609_v24 = vpop.f32.mrf.mxu1 }
 0x187   :  { %v1611_v25 = vpop.f32.mrf.mxu0 }
 0x188   :  { %v1613_v26 = vpop.f32.mrf.mxu1 }
 0x189   :  { %v1615_v27 = vpop.f32.mrf.mxu0 }
 0x18a   :  { %v1617_v28 = vpop.f32.mrf.mxu1 }
 0x18b   :  { %v1619_v29 = vpop.f32.mrf.mxu0 }
 0x18c   :  { %v1621_v30 = vpop.f32.mrf.mxu1 }
 0x18d   :  { %v1623_v31 = vpop.f32.mrf.mxu0 }
 0x18e   :  { %v1625_v32 = vpop.f32.mrf.mxu1 }
 0x18f   :  { %v1627_v33 = vpop.f32.mrf.mxu0 }
 0x190   :  { %v1629_v34 = vpop.f32.mrf.mxu1 }
 0x191   :  { %v677_v35 = vpop.f32.mrf.mxu0 }
 0x192   :  { %v1631_v36 = vpop.f32.mrf.mxu1 }
 0x193   :  { %v679_v37 = vpop.f32.mrf.mxu0 }
 0x194   :  { %v816_v38 = vpop.f32.mrf.mxu1 }
 0x195   :  { %v683_v40 = vpop.f32.mrf.mxu0 }
 0x196   :  { %v820_v41 = vpop.f32.mrf.mxu1 }
 0x197   :  { %v685_v43 = vpop.f32.mrf.mxu0 }
 0x198   :  { %v822_v44 = vpop.f32.mrf.mxu1  ;;  %v686_v10 = vadd.f32 %v685_v43, %v515_v50 }
 0x199   :  { %v689_v45 = vpop.f32.mrf.mxu0 }
 0x19a   :  { %v826_v46 = vpop.f32.mrf.mxu1  ;;  %v690_v6 = vadd.f32 %v689_v45, %v520_v47  ;;  %v678_v45 = vadd.f32 %v677_v35, %v510_v3 }
 0x19b   :  { %v691_v48 = vpop.f32.mrf.mxu0  ;;  %v827_v7 = vadd.f32 %v826_v46, %v520_v47 }
 0x19c   :  { %v828_v49 = vpop.f32.mrf.mxu1  ;;  %v692_v59 = vadd.f32 %v691_v48, %v520_v47  ;;  %v879_v43 = vmax.f32 %v690_v6, 0.0  ;;  %v809_v6 = vadd.f32 %v1625_v32, %v505_v55 }
 0x19d   :  { %v695_v51 = vpop.f32.mrf.mxu0  ;;  %v829_v62 = vadd.f32 %v828_v49, %v520_v47  ;;  %v817_v49 = vadd.f32 %v816_v38, %v510_v3  ;;  %v674_v47 = vadd.f32 %v1627_v33, %v505_v55 }
 0x19e   :  { %v832_v52 = vpop.f32.mrf.mxu1  ;;  %v696_v56 = vadd.f32 %v695_v51, %v525_v39  ;;  %v880_v48 = vmax.f32 %v692_v59, 0.0 }
 0x19f   :  { %v697_v19 = vpop.f32.mrf.mxu0  ;;  %v833_v60 = vadd.f32 %v832_v52, %v525_v39  ;;  %v882_v46 = vmax.f32 %v829_v62, 0.0  ;;  %v668_v62 = vadd.f32 %v1619_v29, %v500_v63  ;;  %v874_v38 = vmax.f32 %v817_v49, 0.0 }
 0x1a0   :  { %v834_v53 = vpop.f32.mrf.mxu1  ;;  %v698_v20 = vadd.f32 %v697_v19, %v525_v39  ;;  %v495_v19 = vpop.permute.xlu0 %494  ;;  %v883_v9 = vmax.f32 %v696_v56, 0.0  ;;  %v868_v29 = vmax.f32 %v674_v47, 0.0  ;;  %v1691_v47 = vld [vmem:[#allocation10_spill] sm:$0xff] }
 0x1a1   :  { %v701_v54 = vpop.f32.mrf.mxu0  ;;  %v835_v57 = vadd.f32 %v834_v53, %v525_v39  ;;  %v821_v39 = vadd.f32 %v820_v41, %v515_v50  ;;  %v885_v52 = vmax.f32 %v833_v60, 0.0  ;;  %v881_v53 = vmax.f32 %v827_v7, 0.0 }
 0x1a2   :  { %v838_v2 = vpop.f32.mrf.mxu1  ;;  %v702_v21 = vadd.f32 %v701_v54, %v530_v42  ;;  %v884_v12 = vmax.f32 %v698_v20, 0.0  ;;  %v803_v41 = vadd.f32 %v1617_v28, %v500_v63  ;;  %v660_v32 = vadd.f32 %v1607_v23, %v495_v19 }
 0x1a3   :  { %v703_v16 = vpop.f32.mrf.mxu0  ;;  %v839_v22 = vadd.f32 %v838_v2, %v530_v42  ;;  %v684_v2 = vadd.f32 %v683_v40, %v515_v50  ;;  %v886_v51 = vmax.f32 %v835_v57, 0.0  ;;  %v815_v40 = vadd.f32 %v1631_v36, %v510_v3 }
 0x1a4   :  { %v704_v0 = vadd.f32 %v703_v16, %v530_v42  ;;  %v840_v1 = vpop.f32.mrf.mxu1  ;;  %v887_v8 = vmax.f32 %v702_v21, 0.0  ;;  %v823_v16 = vadd.f32 %v822_v44, %v515_v50  ;;  %v876_v44 = vmax.f32 %v686_v10, 0.0  ;;  %v485_v7 = vpop.permute.xlu0 %484 }
 0x1a5   :  { %v841_v58 = vadd.f32 %v840_v1, %v530_v42  ;;  %v889_v54 = vmax.f32 %v839_v22, 0.0  ;;  %v680_v42 = vadd.f32 %v679_v37, %v510_v3  ;;  %v875_v37 = vmax.f32 %v684_v2, 0.0 }
 0x1a6   :  { %v888_v61 = vmax.f32 %v704_v0, 0.0  ;;  %v878_v35 = vmax.f32 %v823_v16, 0.0  ;;  %v877_v33 = vmax.f32 %v821_v39, 0.0  ;;  %v666_v10 = vadd.f32 %v1615_v27, %v500_v63  ;;  %v1687_v16 = vld [vmem:[#allocation14_spill] sm:$0xff] }
 0x1a7   :  { %v890_v5 = vmax.f32 %v841_v58, 0.0  ;;  %v805_v36 = vadd.f32 %v1621_v30, %v500_v63  ;;  %v873_v50 = vmax.f32 %v815_v40, 0.0  ;;  %v799_v3 = vadd.f32 %v1613_v26, %v495_v19 }
 0x1a8   :  { %1006 = vmatprep.subr.mxu0 %v888_v61  ;;  %v797_v21 = vadd.f32 %v1609_v24, %v495_v19  ;;  %v864_v20 = vmax.f32 %v668_v62, 0.0  ;;  %v863_v23 = vmax.f32 %v666_v10, 0.0  ;;  %v650_v26 = vadd.f32 %v1595_v4, %v485_v7  ;;  %v475_v24 = vpop.permute.xlu0 %474  ;;  %v1685_v61 = vld [vmem:[#allocation15_spill] sm:$0xff] }
 0x1a9   :  { %1007 = vmatpush1.msra.mxu0 %v887_v8  ;;  %1077 = vmatprep.subr.mxu1 %v890_v5  ;;  %v490_v5 = vpop.permute.xlu1 %489  ;;  %v672_v8 = vadd.f32 %v1623_v31, %v505_v55  ;;  %v871_v31 = vmax.f32 %v678_v45, 0.0  ;;  %v866_v0 = vmax.f32 %v805_v36, 0.0  ;;  %v865_v56 = vmax.f32 %v803_v41, 0.0  ;;  %v939_v10 = vld [vmem:[%s1672_s4] sm:$0x7f]  ;;  %s1205_s4 = scalar_lea.vmem %s1151_s27, 512 }
 0x1aa   :  { %1008 = vmatprep.subr.mxu0 %v884_v12  ;;  %1078 = vmatpush1.msra.mxu1 %v889_v54  ;;  %v811_v12 = vadd.f32 %v1629_v34, %v505_v55  ;;  %v662_v34 = vadd.f32 %v1611_v25, %v495_v19  ;;  %v656_v30 = vadd.f32 %v1603_v17, %v490_v5  ;;  %v869_v25 = vmax.f32 %v809_v6, 0.0  ;;  %p1206_p0 = scmp.ne.s32.totalorder %s1151_s27, %s1205_s4  ;;  %p1211_p2 = scmp.lt.s32.totalorder %s1205_s4, %s1205_s4 }
 0x1ab   :  { %1009 = vmatpush1.msra.mxu0 %v883_v9  ;;  %1079 = vmatprep.subr.mxu1 %v886_v51  ;;  %v872_v9 = vmax.f32 %v680_v42, 0.0  ;;  %v867_v55 = vmax.f32 %v672_v8, 0.0  ;;  %v654_v28 = vadd.f32 %v1599_v14, %v490_v5  ;;  %v793_v22 = vadd.f32 %v1605_v18, %v490_v5  ;;  %v1684_v18 = vld [vmem:[#allocation13_spill] sm:$0xff] }
 0x1ac   :  { %1010 = vmatprep.subr.mxu0 %v880_v48  ;;  %1080 = vmatpush1.msra.mxu1 %v885_v52  ;;  %v870_v27 = vmax.f32 %v811_v12, 0.0  ;;  %v791_v1 = vadd.f32 %v1601_v15, %v490_v5  ;;  %v860_v17 = vmax.f32 %v662_v34, 0.0  ;;  %v648_v57 = vadd.f32 %v1591_v11, %v485_v7  ;;  %v1686_v15 = vld [vmem:[#allocation11_spill] sm:$0xff]  ;;  %v1689_v48 = vld [vmem:[#allocation12_spill] sm:$0xff]  ;;  %p1212_p3 = por %p1211_p2, %p1210_p1 }
 0x1ad   :  { %1011 = vmatpush1.msra.mxu0 %v879_v43  ;;  %1081 = vmatprep.subr.mxu1 %v882_v46  ;;  %v480_v63 = vpop.permute.xlu1 %479  ;;  %v787_v58 = vadd.f32 %v1597_v13, %v485_v7  ;;  %v859_v14 = vmax.f32 %v660_v32, 0.0  ;;  %v862_v59 = vmax.f32 %v799_v3, 0.0  ;;  %v785_v54 = vadd.f32 %v1685_v61, %v485_v7  ;;  %v1688_v13 = vld [vmem:[#allocation9_spill] sm:$0xff]  ;;  %v1690_v43 = vld [vmem:[#allocation7_spill] sm:$0xff]  ;;  %v1692_v5 = vld [vmem:[#allocation8_spill] sm:$0xff] }
 0x1ae   :  { %1012 = vmatprep.subr.mxu0 %v876_v44  ;;  %1082 = vmatpush1.msra.mxu1 %v881_v53  ;;  %v644_v60 = vadd.f32 %v1684_v18, %v480_v63  ;;  %v856_v4 = vmax.f32 %v656_v30, 0.0  ;;  %v861_v19 = vmax.f32 %v797_v21, 0.0  ;;  %v642_v2 = vadd.f32 %v1686_v15, %v480_v63  ;;  %p1213_p4 = pnand %p1212_p3, %p1206_p0 }
 0x1af   :  { %1013 = vmatpush1.msra.mxu0 %v875_v37  ;;  %1083 = vmatprep.subr.mxu1 %v878_v35  ;;  %v781_v51 = vadd.f32 %v1687_v16, %v480_v63  ;;  %v855_v42 = vmax.f32 %v654_v28, 0.0  ;;  %v858_v11 = vmax.f32 %v793_v22, 0.0  ;;  %v638_v39 = vadd.f32 %v1688_v13, %v475_v24 }
 0x1b0   :  { %1014 = vmatprep.subr.mxu0 %v872_v9  ;;  %1084 = vmatpush1.msra.mxu1 %v877_v33  ;;  %v779_v52 = vadd.f32 %v1689_v48, %v480_v63  ;;  %v852_v45 = vmax.f32 %v650_v26, 0.0  ;;  %v857_v49 = vmax.f32 %v791_v1, 0.0  ;;  %v636_v46 = vadd.f32 %v1690_v43, %v475_v24 }
 0x1b1   :  { %1015 = vmatpush1.msra.mxu0 %v871_v31  ;;  %1085 = vmatprep.subr.mxu1 %v874_v38  ;;  %v775_v40 = vadd.f32 %v1691_v47, %v475_v24  ;;  %v851_v44 = vmax.f32 %v648_v57, 0.0  ;;  %v854_v53 = vmax.f32 %v787_v58, 0.0  ;;  %v773_v8 = vadd.f32 %v1692_v5, %v475_v24  ;;  %v992_v31 = vpop.permute.xlu1 %991 }
 0x1b2   :  { %1016 = vmatprep.subr.mxu0 %v868_v29  ;;  %1086 = vmatpush1.msra.mxu1 %v873_v50  ;;  %v848_v12 = vmax.f32 %v644_v60, 0.0  ;;  %v853_v37 = vmax.f32 %v785_v54, 0.0  ;;  %v847_v35 = vmax.f32 %v642_v2, 0.0  ;;  %v850_v62 = vmax.f32 %v781_v51, 0.0 }
 0x1b3   :  { %1017 = vmatpush1.msra.mxu0 %v867_v55  ;;  %1087 = vmatprep.subr.mxu1 %v870_v27  ;;  %v844_v6 = vmax.f32 %v638_v39, 0.0  ;;  %v849_v9 = vmax.f32 %v779_v52, 0.0  ;;  %v843_v33 = vmax.f32 %v636_v46, 0.0  ;;  %v846_v7 = vmax.f32 %v775_v40, 0.0 }
 0x1b4   :  { %1018 = vmatprep.subr.mxu0 %v864_v20  ;;  %1088 = vmatpush1.msra.mxu1 %v869_v25  ;;  %v845_v36 = vmax.f32 %v773_v8, 0.0 }
 0x1b5   :  { %1019 = vmatpush1.msra.mxu0 %v863_v23  ;;  %1089 = vmatprep.subr.mxu1 %v866_v0 }
 0x1b6   :  { %1020 = vmatprep.subr.mxu0 %v860_v17  ;;  %1090 = vmatpush1.msra.mxu1 %v865_v56 }
 0x1b7   :  { %1021 = vmatpush1.msra.mxu0 %v859_v14  ;;  %1091 = vmatprep.subr.mxu1 %v862_v59 }
 0x1b8   :  { %1022 = vmatprep.subr.mxu0 %v856_v4  ;;  %1092 = vmatpush1.msra.mxu1 %v861_v19 }
 0x1b9   :  { %1023 = vmatpush1.msra.mxu0 %v855_v42  ;;  %1093 = vmatprep.subr.mxu1 %v858_v11 }
 0x1ba   :  { %1024 = vmatprep.subr.mxu0 %v852_v45  ;;  %1094 = vmatpush1.msra.mxu1 %v857_v49 }
 0x1bb   :  { %1025 = vmatpush1.msra.mxu0 %v851_v44  ;;  %1095 = vmatprep.subr.mxu1 %v854_v53 }
 0x1bc   :  { %1026 = vmatprep.subr.mxu0 %v848_v12  ;;  %1096 = vmatpush1.msra.mxu1 %v853_v37 }
 0x1bd   :  { %1027 = vmatpush1.msra.mxu0 %v847_v35  ;;  %1097 = vmatprep.subr.mxu1 %v850_v62 }
 0x1be   :  { %1028 = vmatprep.subr.mxu0 %v844_v6  ;;  %1098 = vmatpush1.msra.mxu1 %v849_v9 }
 0x1bf   :  { %1029 = vmatpush1.msra.mxu0 %v843_v33  ;;  %1099 = vmatprep.subr.mxu1 %v846_v7 }
 0x1c0   :  { %1190 = vmatmul.mubr.msk.f32.vlgmr.msra.gmra.mxu0 %vm994_vm9, %v939_v10  ;;  %1100 = vmatpush1.msra.mxu1 %v845_v36 }
 0x1c1   :  { %1191 = vmatmul.mubr.msk.f32.vlgmr.msra.gmra.mxu1 %vm994_vm9, %v939_v10 }
 0x280   :  { %v1064_v38 = vpop.f32.mrf.mxu0 }
 0x281   :  { %v1065_v34 = vadd.f32 %v1064_v38, %v992_v31  ;;  %v1135_v41 = vpop.f32.mrf.mxu1 }
 0x282   :  { %v1136_v29 = vadd.f32 %v1135_v41, %v992_v31  ;;  %v1066_v50 = vpop.f32.mrf.mxu0 }
 0x283   :  { %1140 = vst [vmem:[#allocation4] sm:$0x7f] %v1065_v34  ;;  %v1067_v32 = vadd.f32 %v1066_v50, %v992_v31  ;;  %v1137_v3 = vpop.f32.mrf.mxu1 }
 0x284   :  { %1142 = vst [vmem:[#allocation4 + $0x10] sm:$0x7f] %v1136_v29  ;;  %v1138_v55 = vadd.f32 %v1137_v3, %v992_v31 }
 0x285   :  { %1141 = vst [vmem:[#allocation4 + $0x8] sm:$0x7f] %v1067_v32 }
 0x286   :  { %1143 = vst [vmem:[#allocation4 + $0x18] sm:$0x7f] %v1138_v55 }
 0x287   :  { %1216 = shalt.err (!%p1213_p4)
}
 0x288   :  { %1153 = dma.vmem_to_hbm [thread:$0]  %s1151_s27, 512, %s1674_s6, [#allocation5]  }
 0x289   :  { %1225 = dma.done.wait [#allocation5], 512  }
 0x28a   :  { %1226 = vsyncadd [#allocation5], 4294966784 }
 0x28b   :  { %1157 = vsyncpa [#allocation5], 1 }

</bundles_post_ra>
